<compile_context>
chip_gen: v7x
topology: tpu7x:2x2x1
jax: 0.10.0
libtpu: 0.0.40
codegen_flags: <defaults>
</compile_context>

<pallas_src>
import functools

import jax
import jax.numpy as jnp
from jax import lax
from jax.experimental import pallas as pl
from jax.experimental.pallas import tpu as pltpu

EPS = 1e-5  # torch.nn.LayerNorm default


def _image_proj_kernel(x_ref, w_ref, p_ref, out_ref, *, tokens_per_block, cross_dim):
    # x_ref:   (B, clip_dim)    input dtype; whole array, resident across grid steps
    # w_ref:   (clip_dim, tn)   bf16 column block of W^T (pipelined)
    # p_ref:   (3, tn) f32      row 0: bias, row 1: gamma, row 2: beta (for this block)
    # out_ref: (B, tn)          lane-dense output block
    x = x_ref[...].astype(w_ref.dtype)                    # tiny cast; avoids a wrapper-side op
    proj = jnp.dot(x, w_ref[...],
                   preferred_element_type=jnp.float32)    # (B, tn) f32 accumulation

    # Hoist parameter loads out of the per-token loop (JAX does not CSE these).
    bias = p_ref[0, :]
    gamma = p_ref[1, :]
    beta = p_ref[2, :]
    proj = proj + bias

    # LayerNorm per token. tn = tokens_per_block * cross_dim, so every token's
    # normalization window lives entirely inside this block, and every slice
    # boundary is a multiple of 128 lanes (enforced in the wrapper) -> no
    # relayout copies, unmasked vector stores. All math stays f32.
    for t in range(tokens_per_block):
        lo = t * cross_dim
        hi = lo + cross_dim
        chunk = proj[:, lo:hi]
        mean = jnp.mean(chunk, axis=-1, keepdims=True)
        centered = chunk - mean
        var = jnp.mean(centered * centered, axis=-1, keepdims=True)
        normed = centered * lax.rsqrt(var + EPS)
        out_ref[:, lo:hi] = (normed * gamma[lo:hi] + beta[lo:hi]).astype(out_ref.dtype)


def prepare_image_proj_params(w_torch, b, gamma, beta, num_tokens, cross_dim,
                              matmul_dtype=jnp.bfloat16):
    """One-time init step (keep OUT of the per-call hot path).

    w_torch: (T*C, clip_dim) torch Linear weight (out, in).
    Returns (w_mm, params):
      w_mm:   (clip_dim, T*C) in `matmul_dtype` (bf16) -- stored this way in HBM.
      params: (3, T*C) f32 -- fused bias / tiled gamma / tiled beta.
    """
    T, C = num_tokens, cross_dim
    w_torch = jnp.asarray(w_torch)
    if w_torch.shape[0] != T * C:
        raise ValueError(f"w_torch must have shape ({T * C}, clip_dim); got {w_torch.shape}")
    if b.shape != (T * C,) or gamma.shape != (C,) or beta.shape != (C,):
        raise ValueError(f"bias/gamma/beta shapes inconsistent with (T, C) = ({T}, {C})")
    w_mm = w_torch.T.astype(matmul_dtype)                 # (clip_dim, T*C)
    params = jnp.stack([
        b.astype(jnp.float32),
        jnp.tile(gamma.astype(jnp.float32), T),
        jnp.tile(beta.astype(jnp.float32), T),
    ], axis=0)                                            # (3, T*C)
    return w_mm, params


def _pick_tokens_per_block(num_tokens, cross_dim, clip_dim, w_itemsize,
                           budget_bytes=4 << 20):
    """Largest token count whose W column block stays ~<= budget_bytes and divides T."""
    per_token_w_bytes = cross_dim * clip_dim * w_itemsize
    bt = max(1, min(num_tokens, budget_bytes // max(per_token_w_bytes, 1)))
    while num_tokens % bt != 0:
        bt -= 1
    return bt


def image_proj_model(image_embeds, w_mm, params, clip_extra_context_tokens,
                     cross_attention_dim, *, out_dtype=None, tokens_per_block=None):
    """Forward pass.

    image_embeds: (B, clip_dim).  w_mm / params: from prepare_image_proj_params.
    Returns (B, T, cross_dim).  Batching B >= 8 (ideally 128+) per call is the
    caller-side lever for MXU utilization; the W DMA is amortized across B.
    """
    B, clip_dim = image_embeds.shape
    T, C = clip_extra_context_tokens, cross_attention_dim
    if C % 128 != 0:
        # TODO(synk): add a padded/masked LayerNorm fallback path for C % 128 != 0.
        raise ValueError(f"cross_attention_dim must be a multiple of 128; got {C}")
    if w_mm.shape != (clip_dim, T * C):
        raise ValueError(f"w_mm must have shape ({clip_dim}, {T * C}); got {w_mm.shape}")
    if params.shape != (3, T * C):
        raise ValueError(f"params must have shape (3, {T * C}); got {params.shape}")

    out_dtype = image_embeds.dtype if out_dtype is None else out_dtype

    if tokens_per_block is None:
        tokens_per_block = _pick_tokens_per_block(T, C, clip_dim, w_mm.dtype.itemsize)
    if T % tokens_per_block != 0:
        raise ValueError(f"tokens_per_block={tokens_per_block} must divide T={T}")
    tn = tokens_per_block * C                              # block width, multiple of 128
    grid = (T // tokens_per_block,)

    bytes_accessed = (image_embeds.size * image_embeds.dtype.itemsize
                      + w_mm.size * w_mm.dtype.itemsize
                      + params.size * params.dtype.itemsize
                      + B * T * C * jnp.dtype(out_dtype).itemsize)

    out_flat = pl.pallas_call(
        functools.partial(_image_proj_kernel,
                          tokens_per_block=tokens_per_block, cross_dim=C),
        out_shape=jax.ShapeDtypeStruct((B, T * C), out_dtype),
        grid=grid,
        in_specs=[
            pl.BlockSpec((B, clip_dim), lambda j: (0, 0)),   # x: whole, resident
            pl.BlockSpec((clip_dim, tn), lambda j: (0, j)),  # W^T column block (pipelined)
            pl.BlockSpec((3, tn), lambda j: (0, j)),         # fused bias/gamma/beta block
        ],
        out_specs=pl.BlockSpec((B, tn), lambda j: (0, j)),   # lane-dense output block
        compiler_params=pltpu.CompilerParams(
            dimension_semantics=("parallel",),               # v7x: shard blocks across 2 TCs
        ),
        cost_estimate=pl.CostEstimate(
            flops=2 * B * clip_dim * T * C,
            transcendentals=0,
            bytes_accessed=bytes_accessed,
        ),
    )(image_embeds, w_mm, params)

    # (B, T*C) -> (B, T, C): pure metadata reshape, matches torch .reshape(-1, T, C).
    return out_flat.reshape(B, T, C)


if __name__ == "__main__":
    # Small, module-consistent shapes.
    batch = 2
    clip_embeddings_dim = 256
    cross_attention_dim = 128
    clip_extra_context_tokens = 4
    T, C = clip_extra_context_tokens, cross_attention_dim

    key = jax.random.PRNGKey(0)
    k_x, k_w, k_b, k_g, k_be = jax.random.split(key, 5)

    # Deterministic synthetic parameters (shapes from the module's __init__).
    # torch Linear weight is (out, in).
    w_torch = jax.random.normal(k_w, (T * C, clip_embeddings_dim), jnp.float32) * 0.02
    b = jax.random.normal(k_b, (T * C,), jnp.float32) * 0.02
    gamma = 1.0 + 0.1 * jax.random.normal(k_g, (C,), jnp.float32)
    beta = 0.1 * jax.random.normal(k_be, (C,), jnp.float32)

    image_embeds = jax.random.normal(k_x, (batch, clip_embeddings_dim), jnp.float32)

    # Init-time prep (hoisted out of the per-call hot path).
    w_mm, params = prepare_image_proj_params(w_torch, b, gamma, beta, T, C)

    out = image_proj_model(image_embeds, w_mm, params, T, C)
    out = jax.block_until_ready(out)

    # Pure-JAX f32 reference (module semantics).
    ref = image_embeds @ w_torch.T + b
    ref = ref.reshape(-1, T, C)
    mu = ref.mean(-1, keepdims=True)
    var = ((ref - mu) ** 2).mean(-1, keepdims=True)
    ref = (ref - mu) * lax.rsqrt(var + EPS) * gamma + beta

    assert out.shape == (batch, T, C)
    # Tolerance loosened because matmul operands are bf16 (f32 accumulation,
    # f32 LayerNorm math); acceptable for inference.
    assert jnp.allclose(out, ref, atol=5e-2, rtol=5e-2)
    print("KERNEL_OK")
</pallas_src>

<mosaic_0001>
module attributes {stable_mosaic.version = 11 : i64} {
  func.func @_image_proj_kernel(%arg0: i32, %arg1: memref<2x256xf32, #tpu.memory_space<vmem>>, %arg2: memref<256x512xbf16, #tpu.memory_space<vmem>>, %arg3: memref<3x512xf32, #tpu.memory_space<vmem>>, %arg4: memref<2x512xf32, #tpu.memory_space<vmem>>) attributes {dimension_semantics = [#tpu.dimension_semantics<parallel>], iteration_bounds = array<i64: 1>, scalar_prefetch = 0 : i64, scratch_operands = 0 : i64, tpu.core_type = #tpu.core_type<tc>, window_params = [{pipeline_mode = #tpu.pipeline_mode<synchronous>, transform_indices = @transform_0, window_bounds = array<i64: 2, 256>}, {transform_indices = @transform_1, window_bounds = array<i64: 256, 512>}, {transform_indices = @transform_2, window_bounds = array<i64: 3, 512>}, {transform_indices = @transform_3, window_bounds = array<i64: 2, 512>}]} {
    %c0 = arith.constant 0 : index
    %c0_0 = arith.constant 0 : index
    %0 = vector.load %arg1[%c0, %c0_0] : memref<2x256xf32, #tpu.memory_space<vmem>>, vector<2x256xf32>
    %1 = arith.truncf %0 : vector<2x256xf32> to vector<2x256xbf16>
    %c0_1 = arith.constant 0 : index
    %c0_2 = arith.constant 0 : index
    %2 = vector.load %arg2[%c0_1, %c0_2] : memref<256x512xbf16, #tpu.memory_space<vmem>>, vector<256x512xbf16>
    %cst = arith.constant dense<0.000000e+00> : vector<2x512xf32>
    %3 = tpu.matmul %1, %2, %cst {dimension_numbers = #tpu.dot_dimension_numbers<[1], [0], [0], [1], [0, 0, 1, 1], [], []>} : vector<2x256xbf16>, vector<256x512xbf16>, vector<2x512xf32> -> vector<2x512xf32>
    %c0_3 = arith.constant 0 : index
    %c0_4 = arith.constant 0 : index
    %4 = vector.load %arg3[%c0_3, %c0_4] : memref<3x512xf32, #tpu.memory_space<vmem>>, vector<1x512xf32>
    %5 = vector.shape_cast %4 : vector<1x512xf32> to vector<512xf32>
    %c1 = arith.constant 1 : index
    %c0_5 = arith.constant 0 : index
    %6 = vector.load %arg3[%c1, %c0_5] : memref<3x512xf32, #tpu.memory_space<vmem>>, vector<1x512xf32>
    %7 = vector.shape_cast %6 : vector<1x512xf32> to vector<512xf32>
    %c2 = arith.constant 2 : index
    %c0_6 = arith.constant 0 : index
    %8 = vector.load %arg3[%c2, %c0_6] : memref<3x512xf32, #tpu.memory_space<vmem>>, vector<1x512xf32>
    %9 = vector.shape_cast %8 : vector<1x512xf32> to vector<512xf32>
    %10 = vector.shape_cast %5 : vector<512xf32> to vector<1x512xf32>
    %11 = vector.broadcast %10 : vector<1x512xf32> to vector<2x512xf32>
    %12 = arith.addf %3, %11 : vector<2x512xf32>
    %13 = vector.extract_strided_slice %12 {offsets = [0, 0], sizes = [2, 128], strides = [1, 1]} : vector<2x512xf32> to vector<2x128xf32>
    %cst_7 = arith.constant dense<0.000000e+00> : vector<2xf32>
    %14 = vector.multi_reduction <add>, %13, %cst_7 [1] : vector<2x128xf32> to vector<2xf32>
    %15 = vector.shape_cast %14 : vector<2xf32> to vector<2x1xf32>
    %cst_8 = arith.constant 1.280000e+02 : f32
    %16 = vector.broadcast %cst_8 : f32 to vector<2x1xf32>
    %17 = arith.divf %15, %16 : vector<2x1xf32>
    %18 = vector.broadcast %17 : vector<2x1xf32> to vector<2x128xf32>
    %19 = arith.subf %13, %18 : vector<2x128xf32>
    %20 = arith.mulf %19, %19 : vector<2x128xf32>
    %cst_9 = arith.constant dense<0.000000e+00> : vector<2xf32>
    %21 = vector.multi_reduction <add>, %20, %cst_9 [1] : vector<2x128xf32> to vector<2xf32>
    %22 = vector.shape_cast %21 : vector<2xf32> to vector<2x1xf32>
    %cst_10 = arith.constant 1.280000e+02 : f32
    %23 = vector.broadcast %cst_10 : f32 to vector<2x1xf32>
    %24 = arith.divf %22, %23 : vector<2x1xf32>
    %cst_11 = arith.constant 9.99999974E-6 : f32
    %25 = vector.broadcast %cst_11 : f32 to vector<2x1xf32>
    %26 = arith.addf %24, %25 : vector<2x1xf32>
    %27 = math.rsqrt %26 : vector<2x1xf32>
    %28 = vector.broadcast %27 : vector<2x1xf32> to vector<2x128xf32>
    %29 = arith.mulf %19, %28 : vector<2x128xf32>
    %30 = vector.extract_strided_slice %7 {offsets = [0], sizes = [128], strides = [1]} : vector<512xf32> to vector<128xf32>
    %31 = vector.shape_cast %30 : vector<128xf32> to vector<1x128xf32>
    %32 = vector.broadcast %31 : vector<1x128xf32> to vector<2x128xf32>
    %33 = arith.mulf %29, %32 : vector<2x128xf32>
    %34 = vector.extract_strided_slice %9 {offsets = [0], sizes = [128], strides = [1]} : vector<512xf32> to vector<128xf32>
    %35 = vector.shape_cast %34 : vector<128xf32> to vector<1x128xf32>
    %36 = vector.broadcast %35 : vector<1x128xf32> to vector<2x128xf32>
    %37 = arith.addf %33, %36 : vector<2x128xf32>
    %c0_12 = arith.constant 0 : index
    %c0_13 = arith.constant 0 : index
    %38 = vector.load %arg4[%c0_12, %c0_13] : memref<2x512xf32, #tpu.memory_space<vmem>>, vector<2x128xf32>
    tpu.vector_store %arg4[%c0_12, %c0_13], %37 {strides = array<i32>} : memref<2x512xf32, #tpu.memory_space<vmem>>, vector<2x128xf32>,
    %39 = vector.extract_strided_slice %12 {offsets = [0, 128], sizes = [2, 128], strides = [1, 1]} : vector<2x512xf32> to vector<2x128xf32>
    %cst_14 = arith.constant dense<0.000000e+00> : vector<2xf32>
    %40 = vector.multi_reduction <add>, %39, %cst_14 [1] : vector<2x128xf32> to vector<2xf32>
    %41 = vector.shape_cast %40 : vector<2xf32> to vector<2x1xf32>
    %cst_15 = arith.constant 1.280000e+02 : f32
    %42 = vector.broadcast %cst_15 : f32 to vector<2x1xf32>
    %43 = arith.divf %41, %42 : vector<2x1xf32>
    %44 = vector.broadcast %43 : vector<2x1xf32> to vector<2x128xf32>
    %45 = arith.subf %39, %44 : vector<2x128xf32>
    %46 = arith.mulf %45, %45 : vector<2x128xf32>
    %cst_16 = arith.constant dense<0.000000e+00> : vector<2xf32>
    %47 = vector.multi_reduction <add>, %46, %cst_16 [1] : vector<2x128xf32> to vector<2xf32>
    %48 = vector.shape_cast %47 : vector<2xf32> to vector<2x1xf32>
    %cst_17 = arith.constant 1.280000e+02 : f32
    %49 = vector.broadcast %cst_17 : f32 to vector<2x1xf32>
    %50 = arith.divf %48, %49 : vector<2x1xf32>
    %cst_18 = arith.constant 9.99999974E-6 : f32
    %51 = vector.broadcast %cst_18 : f32 to vector<2x1xf32>
    %52 = arith.addf %50, %51 : vector<2x1xf32>
    %53 = math.rsqrt %52 : vector<2x1xf32>
    %54 = vector.broadcast %53 : vector<2x1xf32> to vector<2x128xf32>
    %55 = arith.mulf %45, %54 : vector<2x128xf32>
    %56 = vector.extract_strided_slice %7 {offsets = [128], sizes = [128], strides = [1]} : vector<512xf32> to vector<128xf32>
    %57 = vector.shape_cast %56 : vector<128xf32> to vector<1x128xf32>
    %58 = vector.broadcast %57 : vector<1x128xf32> to vector<2x128xf32>
    %59 = arith.mulf %55, %58 : vector<2x128xf32>
    %60 = vector.extract_strided_slice %9 {offsets = [128], sizes = [128], strides = [1]} : vector<512xf32> to vector<128xf32>
    %61 = vector.shape_cast %60 : vector<128xf32> to vector<1x128xf32>
    %62 = vector.broadcast %61 : vector<1x128xf32> to vector<2x128xf32>
    %63 = arith.addf %59, %62 : vector<2x128xf32>
    %c0_19 = arith.constant 0 : index
    %c128 = arith.constant 128 : index
    %64 = vector.load %arg4[%c0_19, %c128] : memref<2x512xf32, #tpu.memory_space<vmem>>, vector<2x128xf32>
    tpu.vector_store %arg4[%c0_19, %c128], %63 {strides = array<i32>} : memref<2x512xf32, #tpu.memory_space<vmem>>, vector<2x128xf32>,
    %65 = vector.extract_strided_slice %12 {offsets = [0, 256], sizes = [2, 128], strides = [1, 1]} : vector<2x512xf32> to vector<2x128xf32>
    %cst_20 = arith.constant dense<0.000000e+00> : vector<2xf32>
    %66 = vector.multi_reduction <add>, %65, %cst_20 [1] : vector<2x128xf32> to vector<2xf32>
    %67 = vector.shape_cast %66 : vector<2xf32> to vector<2x1xf32>
    %cst_21 = arith.constant 1.280000e+02 : f32
    %68 = vector.broadcast %cst_21 : f32 to vector<2x1xf32>
    %69 = arith.divf %67, %68 : vector<2x1xf32>
    %70 = vector.broadcast %69 : vector<2x1xf32> to vector<2x128xf32>
    %71 = arith.subf %65, %70 : vector<2x128xf32>
    %72 = arith.mulf %71, %71 : vector<2x128xf32>
    %cst_22 = arith.constant dense<0.000000e+00> : vector<2xf32>
    %73 = vector.multi_reduction <add>, %72, %cst_22 [1] : vector<2x128xf32> to vector<2xf32>
    %74 = vector.shape_cast %73 : vector<2xf32> to vector<2x1xf32>
    %cst_23 = arith.constant 1.280000e+02 : f32
    %75 = vector.broadcast %cst_23 : f32 to vector<2x1xf32>
    %76 = arith.divf %74, %75 : vector<2x1xf32>
    %cst_24 = arith.constant 9.99999974E-6 : f32
    %77 = vector.broadcast %cst_24 : f32 to vector<2x1xf32>
    %78 = arith.addf %76, %77 : vector<2x1xf32>
    %79 = math.rsqrt %78 : vector<2x1xf32>
    %80 = vector.broadcast %79 : vector<2x1xf32> to vector<2x128xf32>
    %81 = arith.mulf %71, %80 : vector<2x128xf32>
    %82 = vector.extract_strided_slice %7 {offsets = [256], sizes = [128], strides = [1]} : vector<512xf32> to vector<128xf32>
    %83 = vector.shape_cast %82 : vector<128xf32> to vector<1x128xf32>
    %84 = vector.broadcast %83 : vector<1x128xf32> to vector<2x128xf32>
    %85 = arith.mulf %81, %84 : vector<2x128xf32>
    %86 = vector.extract_strided_slice %9 {offsets = [256], sizes = [128], strides = [1]} : vector<512xf32> to vector<128xf32>
    %87 = vector.shape_cast %86 : vector<128xf32> to vector<1x128xf32>
    %88 = vector.broadcast %87 : vector<1x128xf32> to vector<2x128xf32>
    %89 = arith.addf %85, %88 : vector<2x128xf32>
    %c0_25 = arith.constant 0 : index
    %c256 = arith.constant 256 : index
    %90 = vector.load %arg4[%c0_25, %c256] : memref<2x512xf32, #tpu.memory_space<vmem>>, vector<2x128xf32>
    tpu.vector_store %arg4[%c0_25, %c256], %89 {strides = array<i32>} : memref<2x512xf32, #tpu.memory_space<vmem>>, vector<2x128xf32>,
    %91 = vector.extract_strided_slice %12 {offsets = [0, 384], sizes = [2, 128], strides = [1, 1]} : vector<2x512xf32> to vector<2x128xf32>
    %cst_26 = arith.constant dense<0.000000e+00> : vector<2xf32>
    %92 = vector.multi_reduction <add>, %91, %cst_26 [1] : vector<2x128xf32> to vector<2xf32>
    %93 = vector.shape_cast %92 : vector<2xf32> to vector<2x1xf32>
    %cst_27 = arith.constant 1.280000e+02 : f32
    %94 = vector.broadcast %cst_27 : f32 to vector<2x1xf32>
    %95 = arith.divf %93, %94 : vector<2x1xf32>
    %96 = vector.broadcast %95 : vector<2x1xf32> to vector<2x128xf32>
    %97 = arith.subf %91, %96 : vector<2x128xf32>
    %98 = arith.mulf %97, %97 : vector<2x128xf32>
    %cst_28 = arith.constant dense<0.000000e+00> : vector<2xf32>
    %99 = vector.multi_reduction <add>, %98, %cst_28 [1] : vector<2x128xf32> to vector<2xf32>
    %100 = vector.shape_cast %99 : vector<2xf32> to vector<2x1xf32>
    %cst_29 = arith.constant 1.280000e+02 : f32
    %101 = vector.broadcast %cst_29 : f32 to vector<2x1xf32>
    %102 = arith.divf %100, %101 : vector<2x1xf32>
    %cst_30 = arith.constant 9.99999974E-6 : f32
    %103 = vector.broadcast %cst_30 : f32 to vector<2x1xf32>
    %104 = arith.addf %102, %103 : vector<2x1xf32>
    %105 = math.rsqrt %104 : vector<2x1xf32>
    %106 = vector.broadcast %105 : vector<2x1xf32> to vector<2x128xf32>
    %107 = arith.mulf %97, %106 : vector<2x128xf32>
    %108 = vector.extract_strided_slice %7 {offsets = [384], sizes = [128], strides = [1]} : vector<512xf32> to vector<128xf32>
    %109 = vector.shape_cast %108 : vector<128xf32> to vector<1x128xf32>
    %110 = vector.broadcast %109 : vector<1x128xf32> to vector<2x128xf32>
    %111 = arith.mulf %107, %110 : vector<2x128xf32>
    %112 = vector.extract_strided_slice %9 {offsets = [384], sizes = [128], strides = [1]} : vector<512xf32> to vector<128xf32>
    %113 = vector.shape_cast %112 : vector<128xf32> to vector<1x128xf32>
    %114 = vector.broadcast %113 : vector<1x128xf32> to vector<2x128xf32>
    %115 = arith.addf %111, %114 : vector<2x128xf32>
    %c0_31 = arith.constant 0 : index
    %c384 = arith.constant 384 : index
    %116 = vector.load %arg4[%c0_31, %c384] : memref<2x512xf32, #tpu.memory_space<vmem>>, vector<2x128xf32>
    tpu.vector_store %arg4[%c0_31, %c384], %115 {strides = array<i32>} : memref<2x512xf32, #tpu.memory_space<vmem>>, vector<2x128xf32>,
    return
  }
  func.func @transform_0(%arg0: i32) -> (i32, i32) {
    %c0_i32 = arith.constant 0 : i32
    %c0_i32_0 = arith.constant 0 : i32
    %c0_i32_1 = arith.constant 0 : i32
    return %c0_i32, %c0_i32_0 : i32, i32
  }
  func.func @transform_1(%arg0: i32) -> (i32, i32) {
    %c0_i32 = arith.constant 0 : i32
    %c0_i32_0 = arith.constant 0 : i32
    return %c0_i32, %arg0 : i32, i32
  }
  func.func @transform_2(%arg0: i32) -> (i32, i32) {
    %c0_i32 = arith.constant 0 : i32
    %c0_i32_0 = arith.constant 0 : i32
    return %c0_i32, %arg0 : i32, i32
  }
  func.func @transform_3(%arg0: i32) -> (i32, i32) {
    %c0_i32 = arith.constant 0 : i32
    %c0_i32_0 = arith.constant 0 : i32
    return %c0_i32, %arg0 : i32, i32
  }
}

</mosaic_0001>

<bundles_post_ra>
// kernel: tpu_custom_call.1
= control target key start
LH: loop header
LB: loop body
LE: loop exit
PB: predicated region body
PF: predicated region fallthrough
CT: control target
= control target key end

     0   :  { %8 = vsyncpa [#allocation3], 0  ;;  %s1050_s0 = inlined_call_operand.hbm [shape: f32[2,256], index: 0, kind: input, shape index: {}]   ;;  %s1051_s1 = inlined_call_operand.hbm [shape: bf16[256,512], index: 1, kind: input, shape index: {}]   ;;  %s1052_s2 = inlined_call_operand.hbm [shape: f32[3,512], index: 2, kind: input, shape index: {}]   ;;  %s1053_s3 = inlined_call_operand.hbm [shape: f32[2,512], index: 3, kind: output, shape index: {}]  }
   0x1   :  { %9 = vsyncpa [#allocation6], 0 }
   0x2   :  { %10 = vsyncpa [#allocation4], 0  ;;  %s957_s12 = smov [#allocation5]   ;;  %s863_s16 = scalar_lea.hbm %s1051_s1, 8192 }
   0x3   :  { %s26_s13 = sshll.u32 %s957_s12, 4  ;;  %p864_p0 = scmp.ne.s32.totalorder %s1051_s1, %s863_s16  ;;  %s27_s13 = int_to_ptr.vmem [resolvable:$true] %s26_s13 }
   0x4   :  { %p867_p1 = scmp.lt.u32.totalorder %s863_s16, %s1051_s1 }
   0x6   :  { %p869_p2 = pnand %p867_p1, %p864_p0 }
   0x8   :  { %872 = shalt.err (!%p869_p2)
}
   0x9   :  { %s873_s21 = scalar_lea.vmem %s27_s13, 8192  ;;  %p878_p4 = scmp.lt.s32.totalorder %s27_s13, %s27_s13 }
   0xa   :  { %p874_p3 = scmp.ne.s32.totalorder %s27_s13, %s873_s21  ;;  %p879_p5 = scmp.lt.s32.totalorder %s873_s21, %s873_s21 }
   0xc   :  { %p880_p6 = por %p879_p5, %p878_p4 }
   0xe   :  { %p881_p7 = pnand %p880_p6, %p874_p3 }
  0x10   :  { %884 = shalt.err (!%p881_p7)
}
  0x11   :  { %s958_s22 = smov 256   ;;  %s959_s23 = smov 16  }
  0x12   :  { %32 = dma.hbm_to_vmem [thread:$0]  %s1051_s1, 8192, %s27_s13, [#allocation6], %s958_s22, %s958_s22, %s959_s23  }
  0x13   :  { %s960_s26 = smov [#allocation2]   ;;  %s961_s28 = smov [#allocation7]  }
  0x14   :  { %s17_s27 = sshll.u32 %s960_s26, 4  ;;  %s39_s29 = sshll.u32 %s961_s28, 4  ;;  %s18_s27 = int_to_ptr.vmem [resolvable:$true] %s17_s27  ;;  %s40_s29 = int_to_ptr.vmem [resolvable:$true] %s39_s29 }
  0x15   :  { %s885_s5 = scalar_lea.hbm %s1050_s0, 64 }
  0x16   :  { %p886_p8 = scmp.ne.s32.totalorder %s1050_s0, %s885_s5  ;;  %p889_p9 = scmp.lt.u32.totalorder %s885_s5, %s1050_s0 }
  0x18   :  { %p891_p10 = pnand %p889_p9, %p886_p8 }
  0x1a   :  { %894 = shalt.err (!%p891_p10)
}
  0x1b   :  { %s895_s1 = scalar_lea.vmem %s18_s27, 64  ;;  %p900_p12 = scmp.lt.s32.totalorder %s18_s27, %s18_s27 }
  0x1c   :  { %p896_p11 = scmp.ne.s32.totalorder %s18_s27, %s895_s1  ;;  %p901_p13 = scmp.lt.s32.totalorder %s895_s1, %s895_s1 }
  0x1e   :  { %p902_p0 = por %p901_p13, %p900_p12 }
  0x20   :  { %p903_p1 = pnand %p902_p0, %p896_p11 }
  0x22   :  { %906 = shalt.err (!%p903_p1)
}
  0x23   :  { %20 = dma.hbm_to_vmem [thread:$0]  %s1050_s0, 64, %s18_s27, [#allocation3]  }
  0x24   :  { %s907_s14 = scalar_lea.hbm %s1052_s2, 256 }
  0x25   :  { %p908_p2 = scmp.ne.s32.totalorder %s1052_s2, %s907_s14  ;;  %p911_p3 = scmp.lt.u32.totalorder %s907_s14, %s1052_s2 }
  0x27   :  { %p913_p4 = pnand %p911_p3, %p908_p2 }
  0x29   :  { %916 = shalt.err (!%p913_p4)
}
  0x2a   :  { %s917_s19 = scalar_lea.vmem %s40_s29, 256  ;;  %p922_p6 = scmp.lt.s32.totalorder %s40_s29, %s40_s29 }
  0x2b   :  { %p918_p5 = scmp.ne.s32.totalorder %s40_s29, %s917_s19  ;;  %p923_p7 = scmp.lt.s32.totalorder %s917_s19, %s917_s19 }
  0x2d   :  { %p924_p8 = por %p923_p7, %p922_p6 }
  0x2f   :  { %p925_p9 = pnand %p924_p8, %p918_p5 }
  0x31   :  { %928 = shalt.err (!%p925_p9)
}
  0x32   :  { %42 = dma.hbm_to_vmem [thread:$0]  %s1052_s2, 256, %s40_s29, [#allocation6]  }
  0x33   :  { %951 = dma.done.wait [#allocation3], 64  }
  0x34   :  { %952 = vsyncadd [#allocation3], 4294967232 }
  0x35   :  { %953 = dma.done.wait [#allocation6], 8448  }
  0x36   :  { %954 = vsyncadd [#allocation6], 4294958848  ;;  %v759_v0 = vld [vmem:[#allocation5 + $0x4] ss:$16 sps:$4 sm:$0xff]   ;;  %v761_v1 = vld [vmem:[#allocation5 + $0xc] ss:$16 sps:$4 sm:$0xff]  }
  0x37   :  { %476 = vmatprep.subr.bf16.mxu0 %v759_v0  ;;  %v763_v2 = vld [vmem:[#allocation5] ss:$16 sps:$4 sm:$0xff]   ;;  %v764_v3 = vld [vmem:[#allocation5 + $0x8] ss:$16 sps:$4 sm:$0xff]   ;;  %517 = vmatprep.subr.bf16.mxu1 %v761_v1  ;;  %v765_v4 = vld [vmem:[#allocation5 + $0x24] ss:$16 sps:$4 sm:$0xff]  }
  0x38   :  { %477 = vmatpush1.bf16.msra.mxu0 %v763_v2  ;;  %518 = vmatpush1.bf16.msra.mxu1 %v764_v3  ;;  %v767_v5 = vld [vmem:[#allocation5 + $0x2c] ss:$16 sps:$4 sm:$0xff]   ;;  %v769_v6 = vld [vmem:[#allocation5 + $0x20] ss:$16 sps:$4 sm:$0xff]   ;;  %v770_v7 = vld [vmem:[#allocation5 + $0x28] ss:$16 sps:$4 sm:$0xff]  }
  0x39   :  { %478 = vmatprep.subr.bf16.mxu0 %v765_v4  ;;  %519 = vmatprep.subr.bf16.mxu1 %v767_v5  ;;  %v771_v8 = vld [vmem:[#allocation5 + $0x44] ss:$16 sps:$4 sm:$0xff]   ;;  %v773_v9 = vld [vmem:[#allocation5 + $0x4c] ss:$16 sps:$4 sm:$0xff]   ;;  %v775_v10 = vld [vmem:[#allocation5 + $0x40] ss:$16 sps:$4 sm:$0xff]   ;;  %v136_v4 = vlaneseq }
  0x3a   :  { %v776_v11 = vld [vmem:[#allocation5 + $0x48] ss:$16 sps:$4 sm:$0xff]   ;;  %v777_v12 = vld [vmem:[#allocation5 + $0x64] ss:$16 sps:$4 sm:$0xff]   ;;  %v779_v13 = vld [vmem:[#allocation5 + $0x6c] ss:$16 sps:$4 sm:$0xff]  }
  0x3b   :  { %v781_v14 = vld [vmem:[#allocation5 + $0x60] ss:$16 sps:$4 sm:$0xff]   ;;  %v782_v15 = vld [vmem:[#allocation5 + $0x68] ss:$16 sps:$4 sm:$0xff]   ;;  %v783_v16 = vld [vmem:[#allocation5 + $0x84] ss:$16 sps:$4 sm:$0xff]  }
  0x3c   :  { %479 = vmatpush1.bf16.msra.mxu0 %v769_v6  ;;  %520 = vmatpush1.bf16.msra.mxu1 %v770_v7  ;;  %v785_v17 = vld [vmem:[#allocation5 + $0x8c] ss:$16 sps:$4 sm:$0xff]   ;;  %v787_v18 = vld [vmem:[#allocation5 + $0x80] ss:$16 sps:$4 sm:$0xff]   ;;  %v788_v19 = vld [vmem:[#allocation5 + $0x88] ss:$16 sps:$4 sm:$0xff]  }
  0x3d   :  { %480 = vmatprep.subr.bf16.mxu0 %v771_v8  ;;  %521 = vmatprep.subr.bf16.mxu1 %v773_v9  ;;  %v789_v20 = vld [vmem:[#allocation5 + $0xa4] ss:$16 sps:$4 sm:$0xff]   ;;  %v791_v21 = vld [vmem:[#allocation5 + $0xac] ss:$16 sps:$4 sm:$0xff]   ;;  %v793_v22 = vld [vmem:[#allocation5 + $0xa0] ss:$16 sps:$4 sm:$0xff]  }
  0x3e   :  { %v794_v23 = vld [vmem:[#allocation5 + $0xa8] ss:$16 sps:$4 sm:$0xff]   ;;  %v795_v24 = vld [vmem:[#allocation5 + $0xc4] ss:$16 sps:$4 sm:$0xff]   ;;  %v797_v25 = vld [vmem:[#allocation5 + $0xcc] ss:$16 sps:$4 sm:$0xff]  }
  0x3f   :  { %v799_v26 = vld [vmem:[#allocation5 + $0xc0] ss:$16 sps:$4 sm:$0xff]   ;;  %v800_v27 = vld [vmem:[#allocation5 + $0xc8] ss:$16 sps:$4 sm:$0xff]   ;;  %v801_v28 = vld [vmem:[#allocation5 + $0xe4] ss:$16 sps:$4 sm:$0xff]  }
  0x40   :  { %481 = vmatpush1.bf16.msra.mxu0 %v775_v10  ;;  %522 = vmatpush1.bf16.msra.mxu1 %v776_v11  ;;  %v803_v29 = vld [vmem:[#allocation5 + $0xec] ss:$16 sps:$4 sm:$0xff]   ;;  %v805_v30 = vld [vmem:[#allocation5 + $0xe0] ss:$16 sps:$4 sm:$0xff]   ;;  %v806_v31 = vld [vmem:[#allocation5 + $0xe8] ss:$16 sps:$4 sm:$0xff]  }
  0x41   :  { %482 = vmatprep.subr.bf16.mxu0 %v777_v12  ;;  %523 = vmatprep.subr.bf16.mxu1 %v779_v13  ;;  %v807_v32 = vld [vmem:[#allocation5 + $0x104] ss:$16 sps:$4 sm:$0xff]   ;;  %v809_v33 = vld [vmem:[#allocation5 + $0x10c] ss:$16 sps:$4 sm:$0xff]   ;;  %v811_v34 = vld [vmem:[#allocation5 + $0x100] ss:$16 sps:$4 sm:$0xff]  }
  0x42   :  { %v812_v35 = vld [vmem:[#allocation5 + $0x108] ss:$16 sps:$4 sm:$0xff]   ;;  %v813_v36 = vld [vmem:[#allocation5 + $0x124] ss:$16 sps:$4 sm:$0xff]   ;;  %v815_v37 = vld [vmem:[#allocation5 + $0x12c] ss:$16 sps:$4 sm:$0xff]  }
  0x43   :  { %v817_v38 = vld [vmem:[#allocation5 + $0x120] ss:$16 sps:$4 sm:$0xff]   ;;  %v818_v39 = vld [vmem:[#allocation5 + $0x128] ss:$16 sps:$4 sm:$0xff]   ;;  %v819_v40 = vld [vmem:[#allocation5 + $0x144] ss:$16 sps:$4 sm:$0xff]  }
  0x44   :  { %483 = vmatpush1.bf16.msra.mxu0 %v781_v14  ;;  %524 = vmatpush1.bf16.msra.mxu1 %v782_v15  ;;  %v821_v41 = vld [vmem:[#allocation5 + $0x14c] ss:$16 sps:$4 sm:$0xff]   ;;  %v823_v42 = vld [vmem:[#allocation5 + $0x140] ss:$16 sps:$4 sm:$0xff]   ;;  %v824_v43 = vld [vmem:[#allocation5 + $0x148] ss:$16 sps:$4 sm:$0xff]  }
  0x45   :  { %484 = vmatprep.subr.bf16.mxu0 %v783_v16  ;;  %525 = vmatprep.subr.bf16.mxu1 %v785_v17  ;;  %v825_v44 = vld [vmem:[#allocation5 + $0x164] ss:$16 sps:$4 sm:$0xff]   ;;  %v827_v45 = vld [vmem:[#allocation5 + $0x16c] ss:$16 sps:$4 sm:$0xff]   ;;  %v829_v47 = vld [vmem:[#allocation5 + $0x160] ss:$16 sps:$4 sm:$0xff]  }
  0x46   :  { %v688_v46 = vld.sshfl [vmem:[#allocation2] sm:$0x33 pattern:$0x76325410]  ;;  %v830_v48 = vld [vmem:[#allocation5 + $0x168] ss:$16 sps:$4 sm:$0xff]  }
  0x47   :  { %v61_v49 = vcombine.high %v688_v46, %v688_v46  ;;  %v831_v50 = vld [vmem:[#allocation5 + $0x184] ss:$16 sps:$4 sm:$0xff]   ;;  %v833_v51 = vld [vmem:[#allocation5 + $0x18c] ss:$16 sps:$4 sm:$0xff]   ;;  %v835_v53 = vld [vmem:[#allocation5 + $0x180] ss:$16 sps:$4 sm:$0xff]   ;;  %v64_v3 = vpack.c.bf16 %v688_v46, %v688_v46 }
  0x48   :  { %485 = vmatpush1.bf16.msra.mxu0 %v787_v18  ;;  %526 = vmatpush1.bf16.msra.mxu1 %v788_v19  ;;  %v836_v54 = vld [vmem:[#allocation5 + $0x188] ss:$16 sps:$4 sm:$0xff]   ;;  %v837_v55 = vld [vmem:[#allocation5 + $0x1a4] ss:$16 sps:$4 sm:$0xff]   ;;  %v839_v56 = vld [vmem:[#allocation5 + $0x1ac] ss:$16 sps:$4 sm:$0xff]  }
  0x49   :  { %486 = vmatprep.subr.bf16.mxu0 %v789_v20  ;;  %527 = vmatprep.subr.bf16.mxu1 %v791_v21  ;;  %v65_v52 = vpack.c.bf16 %v61_v49, %v61_v49  ;;  %v841_v57 = vld [vmem:[#allocation5 + $0x1a0] ss:$16 sps:$4 sm:$0xff]   ;;  %v842_v58 = vld [vmem:[#allocation5 + $0x1a8] ss:$16 sps:$4 sm:$0xff]   ;;  %v843_v59 = vld [vmem:[#allocation5 + $0x1c4] ss:$16 sps:$4 sm:$0xff]  }
  0x4a   :  { %v845_v60 = vld [vmem:[#allocation5 + $0x1cc] ss:$16 sps:$4 sm:$0xff]   ;;  %v847_v61 = vld [vmem:[#allocation5 + $0x1c0] ss:$16 sps:$4 sm:$0xff]   ;;  %v848_v62 = vld [vmem:[#allocation5 + $0x1c8] ss:$16 sps:$4 sm:$0xff]  }
  0x4b   :  { %508 = vmatprep.mubr.bf16.mxu0 %v65_v52  ;;  %549 = vmatprep.mubr.bf16.mxu1 %v65_v52  ;;  %v849_v63 = vld [vmem:[#allocation5 + $0x1e4] ss:$16 sps:$4 sm:$0xff]   ;;  %v851_v0 = vld [vmem:[#allocation5 + $0x1ec] ss:$16 sps:$4 sm:$0xff]   ;;  %v853_v1 = vld [vmem:[#allocation5 + $0x1e0] ss:$16 sps:$4 sm:$0xff]  }
  0x4c   :  { %487 = vmatpush1.bf16.msra.mxu0 %v793_v22  ;;  %528 = vmatpush1.bf16.msra.mxu1 %v794_v23  ;;  %v854_v2 = vld [vmem:[#allocation5 + $0x1e8] ss:$16 sps:$4 sm:$0xff]   ;;  %v137_v5 = vshrl.u32 %v136_v4, 7  ;;  %vm558_vm0 = vcmask 1041408   ;;  %s962_s2 = smov [#allocation8]  }
  0x4d   :  { %488 = vmatprep.subr.bf16.mxu0 %v795_v24  ;;  %529 = vmatprep.subr.bf16.mxu1 %v797_v25  ;;  %v130_v8 = vld [vmem:[#allocation7] ss:$4 sm:$0xf]  ;;  %s678_s21 = sshll.u32 %s962_s2, 4  ;;  %s679_s21 = int_to_ptr.vmem [resolvable:$true] %s678_s21 }
  0x4e   :  { %v1019_v6 = vsub.s32 0, %v137_v5  ;;  %v146_v7 = vsub.s32 2, %v137_v5  ;;  %v150_v9 = vsub.s32 3, %v137_v5  ;;  %v142_v10 = vsub.s32 1, %v137_v5  ;;  %s929_s22 = scalar_lea.vmem %s679_s21, 128  ;;  %p934_p11 = scmp.lt.s32.totalorder %s679_s21, %s679_s21 }
  0x4f   :  { %p930_p10 = scmp.ne.s32.totalorder %s679_s21, %s929_s22  ;;  %p935_p12 = scmp.lt.s32.totalorder %s929_s22, %s929_s22 }
  0x50   :  { %489 = vmatpush1.bf16.msra.mxu0 %v799_v26  ;;  %530 = vmatpush1.bf16.msra.mxu1 %v800_v27  ;;  %v139_v11 = vrot.slane %v130_v8, %v1019_v6  ;;  %v147_v12 = vrot.slane %v130_v8, %v146_v7  ;;  %v151_v13 = vrot.slane %v130_v8, %v150_v9 }
  0x51   :  { %490 = vmatprep.subr.bf16.mxu0 %v801_v28  ;;  %531 = vmatprep.subr.bf16.mxu1 %v803_v29  ;;  %v143_v14 = vrot.slane %v130_v8, %v142_v10  ;;  %p936_p13 = por %p935_p12, %p934_p11 }
  0x53   :  { %p937_p0 = pnand %p936_p13, %p930_p10 }
  0x54   :  { %491 = vmatpush1.bf16.msra.mxu0 %v805_v30  ;;  %532 = vmatpush1.bf16.msra.mxu1 %v806_v31 }
  0x55   :  { %492 = vmatprep.subr.bf16.mxu0 %v807_v32  ;;  %533 = vmatprep.subr.bf16.mxu1 %v809_v33 }
  0x58   :  { %493 = vmatpush1.bf16.msra.mxu0 %v811_v34  ;;  %534 = vmatpush1.bf16.msra.mxu1 %v812_v35 }
  0x59   :  { %494 = vmatprep.subr.bf16.mxu0 %v813_v36  ;;  %535 = vmatprep.subr.bf16.mxu1 %v815_v37 }
  0x5c   :  { %495 = vmatpush1.bf16.msra.mxu0 %v817_v38  ;;  %536 = vmatpush1.bf16.msra.mxu1 %v818_v39 }
  0x5d   :  { %496 = vmatprep.subr.bf16.mxu0 %v819_v40  ;;  %537 = vmatprep.subr.bf16.mxu1 %v821_v41 }
  0x60   :  { %497 = vmatpush1.bf16.msra.mxu0 %v823_v42  ;;  %538 = vmatpush1.bf16.msra.mxu1 %v824_v43 }
  0x61   :  { %498 = vmatprep.subr.bf16.mxu0 %v825_v44  ;;  %539 = vmatprep.subr.bf16.mxu1 %v827_v45 }
  0x64   :  { %499 = vmatpush1.bf16.msra.mxu0 %v829_v47  ;;  %540 = vmatpush1.bf16.msra.mxu1 %v830_v48 }
  0x65   :  { %500 = vmatprep.subr.bf16.mxu0 %v831_v50  ;;  %541 = vmatprep.subr.bf16.mxu1 %v833_v51 }
  0x68   :  { %501 = vmatpush1.bf16.msra.mxu0 %v835_v53  ;;  %542 = vmatpush1.bf16.msra.mxu1 %v836_v54 }
  0x69   :  { %502 = vmatprep.subr.bf16.mxu0 %v837_v55  ;;  %543 = vmatprep.subr.bf16.mxu1 %v839_v56 }
  0x6c   :  { %503 = vmatpush1.bf16.msra.mxu0 %v841_v57  ;;  %544 = vmatpush1.bf16.msra.mxu1 %v842_v58 }
  0x6d   :  { %504 = vmatprep.subr.bf16.mxu0 %v843_v59  ;;  %545 = vmatprep.subr.bf16.mxu1 %v845_v60 }
  0x70   :  { %505 = vmatpush1.bf16.msra.mxu0 %v847_v61  ;;  %546 = vmatpush1.bf16.msra.mxu1 %v848_v62 }
  0x71   :  { %506 = vmatprep.subr.bf16.mxu0 %v849_v63  ;;  %547 = vmatprep.subr.bf16.mxu1 %v851_v0  ;;  %v132_v63 = vld [vmem:[#allocation7 + $0x1] ss:$4 sm:$0xf]  ;;  %v134_v0 = vld [vmem:[#allocation7 + $0x2] ss:$4 sm:$0xf] }
  0x72   :  { %v629_v4 = vrot.slane %v132_v63, 2  ;;  %v584_v7 = vrot.slane %v134_v0, %v1019_v6  ;;  %v608_v8 = vrot.slane %v134_v0, 1  ;;  %v636_v9 = vrot.slane %v134_v0, 2 }
  0x74   :  { %507 = vmatpush1.bf16.msra.mxu0 %v853_v1  ;;  %548 = vmatpush1.bf16.msra.mxu1 %v854_v2  ;;  %v577_v1 = vrot.slane %v132_v63, %v1019_v6  ;;  %v601_v2 = vrot.slane %v132_v63, 1 }
  0x77   :  { %509 = vmatmul.mubr.bf16.vlgmr.msra.gmra.mrb[0].mxu0 %v64_v3  ;;  %550 = vmatmul.mubr.bf16.vlgmr.msra.gmra.mrb[0].mxu1 %v64_v3 }
 0x14a   :  { %v510_v15 = vpop.f32.mrb[0].mxu0  ;;  %v551_v16 = vpop.f32.mrb[0].mxu1 }
 0x14b   :  { %v511_v17 = vadd.f32 %v510_v15, %v139_v11  ;;  %v552_v18 = vadd.f32 %v551_v16, %v147_v12  ;;  %v512_v19 = vpop.f32.mrb[1].mxu0  ;;  %v553_v20 = vpop.f32.mrb[1].mxu1  ;;  %v605_v11 = vrot.slane %v601_v2, %v1019_v6  ;;  %v657_v12 = vrot.slane %v132_v63, 3 }
 0x14c   :  { %v514_v21 = vpop.f32.mrb[2].mxu0  ;;  %v554_v22 = vadd.f32 %v553_v20, %v151_v13  ;;  %v555_v23 = vpop.f32.mrb[2].mxu1  ;;  %v513_v24 = vadd.f32 %v512_v19, %v143_v14  ;;  %v633_v14 = vrot.slane %v629_v4, %v1019_v6  ;;  %v664_v19 = vrot.slane %v134_v0, 3 }
 0x14d   :  { %v515_v25 = vpop.f32.mrb[3].mxu0  ;;  %v556_v26 = vpop.f32.mrb[3].mxu1  ;;  %v616_v27 = vsel %vm558_vm0, %v552_v18, 0.0  ;;  %v559_v28 = vsel %vm558_vm0, %v511_v17, 0.0  ;;  %v640_v21 = vrot.slane %v636_v9, %v1019_v6  ;;  %v661_v23 = vrot.slane %v657_v12, %v1019_v6 }
 0x14e   :  { %617 = vadd.xlane.f32.xlu1 %v616_v27  ;;  %560 = vadd.xlane.f32.xlu0 %v559_v28  ;;  %v644_v29 = vsel %vm558_vm0, %v554_v22, 0.0  ;;  %v588_v30 = vsel %vm558_vm0, %v513_v24, 0.0  ;;  %v668_v28 = vrot.slane %v664_v19, %v1019_v6 }
 0x152   :  { %645 = vadd.xlane.f32.xlu1 %v644_v29  ;;  %589 = vadd.xlane.f32.xlu0 %v588_v30 }
 0x1db   :  { %v618_v31 = vpop.xlane.xlu1 %617  ;;  %v561_v32 = vpop.xlane.xlu0 %560 }
 0x1dc   :  { %v619_v33 = vmul.f32 0.0078125, %v618_v31  ;;  %v563_v34 = vmul.f32 0.0078125, %v561_v32 }
 0x1de   :  { %v620_v35 = vsub.f32 %v552_v18, %v619_v33  ;;  %v564_v36 = vsub.f32 %v511_v17, %v563_v34  ;;  %v612_v18 = vrot.slane %v608_v8, %v1019_v6 }
 0x1df   :  { %v646_v37 = vpop.xlane.xlu1 %645  ;;  %v590_v38 = vpop.xlane.xlu0 %589 }
 0x1e0   :  { %v647_v39 = vmul.f32 0.0078125, %v646_v37  ;;  %v591_v40 = vmul.f32 0.0078125, %v590_v38  ;;  %v565_v41 = vmul.f32 %v564_v36, %v564_v36  ;;  %v621_v45 = vmul.f32 %v620_v35, %v620_v35 }
 0x1e2   :  { %v648_v42 = vsub.f32 %v554_v22, %v647_v39  ;;  %v592_v43 = vsub.f32 %v513_v24, %v591_v40  ;;  %v566_v44 = vsel %vm558_vm0, %v565_v41, 0.0  ;;  %v622_v47 = vsel %vm558_vm0, %v621_v45, 0.0 }
 0x1e3   :  { %567 = vadd.xlane.f32.xlu0 %v566_v44 }
 0x1e4   :  { %v593_v46 = vmul.f32 %v592_v43, %v592_v43  ;;  %v649_v49 = vmul.f32 %v648_v42, %v648_v42 }
 0x1e6   :  { %v594_v48 = vsel %vm558_vm0, %v593_v46, 0.0  ;;  %v650_v50 = vsel %vm558_vm0, %v649_v49, 0.0 }
 0x1e7   :  { %623 = vadd.xlane.f32.xlu0 %v622_v47  ;;  %595 = vadd.xlane.f32.xlu1 %v594_v48 }
 0x1eb   :  { %651 = vadd.xlane.f32.xlu1 %v650_v50 }
 0x270   :  { %v568_v51 = vpop.xlane.xlu0 %567 }
 0x271   :  { %v569_v52 = vmul.f32 0.0078125, %v568_v51 }
 0x273   :  { %v570_v53 = vadd.f32 1e-05, %v569_v52 }
 0x274   :  { %v596_v54 = vpop.xlane.xlu1 %595  ;;  %v624_v55 = vpop.xlane.xlu0 %623 }
 0x275   :  { %855 = vrsqrt.f32 %v570_v53  ;;  %v597_v56 = vmul.f32 0.0078125, %v596_v54  ;;  %v625_v57 = vmul.f32 0.0078125, %v624_v55 }
 0x277   :  { %v598_v58 = vadd.f32 1e-05, %v597_v56  ;;  %v626_v59 = vadd.f32 1e-05, %v625_v57 }
 0x278   :  { %v652_v60 = vpop.xlane.xlu1 %651 }
 0x279   :  { %857 = vrsqrt.f32 %v598_v58  ;;  %v653_v61 = vmul.f32 0.0078125, %v652_v60 }
 0x27a   :  { %859 = vrsqrt.f32 %v626_v59 }
 0x27b   :  { %v654_v62 = vadd.f32 1e-05, %v653_v61 }
 0x27d   :  { %861 = vrsqrt.f32 %v654_v62 }
 0x27f   :  { %v856_v3 = vpop.eup %855 }
 0x280   :  { %v572_v5 = vmul.f32 %v856_v3, %v564_v36 }
 0x282   :  { %v579_v10 = vmul.f32 %v577_v1, %v572_v5 }
 0x283   :  { %v858_v13 = vpop.eup %857 }
 0x284   :  { %v860_v15 = vpop.eup %859  ;;  %v600_v16 = vmul.f32 %v858_v13, %v592_v43  ;;  %v586_v17 = vadd.f32 %v584_v7, %v579_v10 }
 0x285   :  { %v628_v20 = vmul.f32 %v860_v15, %v620_v35 }
 0x286   :  { %587 = vst [vmem:[#allocation8] sm:$0x3] %v586_v17  ;;  %v607_v22 = vmul.f32 %v605_v11, %v600_v16 }
 0x287   :  { %v862_v24 = vpop.eup %861  ;;  %v635_v25 = vmul.f32 %v633_v14, %v628_v20 }
 0x288   :  { %v656_v26 = vmul.f32 %v862_v24, %v648_v42  ;;  %v614_v27 = vadd.f32 %v612_v18, %v607_v22 }
 0x289   :  { %v642_v29 = vadd.f32 %v640_v21, %v635_v25 }
 0x28a   :  { %615 = vst [vmem:[#allocation8 + $0x2] sm:$0x3] %v614_v27  ;;  %v663_v30 = vmul.f32 %v661_v23, %v656_v26 }
 0x28b   :  { %643 = vst [vmem:[#allocation8 + $0x4] sm:$0x3] %v642_v29 }
 0x28c   :  { %v670_v31 = vadd.f32 %v668_v28, %v663_v30 }
 0x28e   :  { %671 = vst [vmem:[#allocation8 + $0x6] sm:$0x3] %v670_v31 }
 0x28f   :  { %940 = shalt.err (!%p937_p0)
}
 0x290   :  { %s941_s25 = scalar_lea.hbm %s1053_s3, 128 }
 0x291   :  { %p942_p1 = scmp.ne.s32.totalorder %s1053_s3, %s941_s25  ;;  %p945_p2 = scmp.lt.u32.totalorder %s941_s25, %s1053_s3 }
 0x293   :  { %p947_p3 = pnand %p945_p2, %p942_p1 }
 0x295   :  { %950 = shalt.err (!%p947_p3)
}
 0x296   :  { %681 = dma.vmem_to_hbm [thread:$0]  %s679_s21, 128, %s1053_s3, [#allocation4]  }
 0x297   :  { %955 = dma.done.wait [#allocation4], 128  }
 0x298   :  { %956 = vsyncadd [#allocation4], 4294967168 }
 0x299   :  { %685 = vsyncpa [#allocation3], 1 }
 0x29a   :  { %686 = vsyncpa [#allocation6], 1 }
 0x29b   :  { %687 = vsyncpa [#allocation4], 1 }

</bundles_post_ra>
